<compile_context>
chip_gen: v7x
topology: tpu7x:2x2x1
jax: 0.10.0
libtpu: 0.0.40
codegen_flags: <defaults>
</compile_context>

<pallas_src>
import jax
import jax.numpy as jnp
from jax.experimental import pallas as pl
from jax.experimental.pallas import tpu as pltpu

NUM_COLUMNS = 67
N_HIDDEN = 32


def _mlp_kernel(x_ref, w1_ref, b1_ref, w2t_ref, b2c_ref, w3t_ref, b3_ref, o_ref):
    """One batch tile of the fused MLP.

    x_ref   : (TM, 67) f32  -- batch tile (pipelined over the grid)
    w1_ref  : (67, 32) f32, b1_ref: (1, 32) f32
    w2t_ref : (16, 32) f32, b2c_ref: (16, 1) f32   (transposed layer-2 params)
    w3t_ref : (1, 16)  f32, b3_ref: (1, 1)  f32
    o_ref   : (1, TM)  f32  -- lane-dense output row for this tile
    """
    x = x_ref[...]

    # Layer 1 (row-major, keeps x's HBM layout): (TM,67) @ (67,32) -> (TM,32).
    h1 = jnp.dot(x, w1_ref[...], preferred_element_type=jnp.float32) + b1_ref[...]
    h1 = jnp.maximum(h1, 0.0)                                     # ReLU

    # Layer 2 in the batch-on-lanes orientation:
    #   (16,32) contracted with (TM,32) on the 32-dim -> (16, TM).
    h2t = jax.lax.dot_general(
        w2t_ref[...], h1,
        dimension_numbers=(((1,), (1,)), ((), ())),
        preferred_element_type=jnp.float32,
    ) + b2c_ref[...]
    h2t = jnp.maximum(h2t, 0.0)                                   # ReLU

    # Layer 3: plain matmul (1,16) @ (16,TM) -> (1,TM), already lane-dense.
    z = jnp.dot(w3t_ref[...], h2t, preferred_element_type=jnp.float32) + b3_ref[...]
    o_ref[...] = jax.nn.sigmoid(z)                                # (1, TM) f32


def rank_predictor_ensemble(x, params, *, tm_max=8192):
    """x: (B, 67) float32 -> (B, 1) float32, matching the PyTorch forward."""
    w1, b1, w2, b2, w3, b3 = params
    B = x.shape[0]

    # Batch tile: multiple of 128 (lane-dense output blocks). Sized so that
    # batches up to 2*tm_max split into exactly 2 tiles (both v7x TCs used via
    # the "parallel" axis), capped at tm_max so per-step HBM traffic dominates
    # the fixed per-grid-step overhead.
    TM = max(128, min(tm_max, pl.cdiv(pl.cdiv(B, 2), 128) * 128))
    num_tiles = pl.cdiv(B, TM)

    # One-time reshapes of the tiny parameters for the transposed layers 2-3.
    # x itself is fed as-is: no pad / cast pre-pass over the dominant input.
    w2t = w2.T                    # (16, 32)
    b2c = b2.reshape(-1, 1)       # (16, 1)
    w3t = w3.reshape(1, -1)       # (1, 16)

    resident = lambda a: pl.BlockSpec(a.shape, lambda i: (0, 0))

    out = pl.pallas_call(
        _mlp_kernel,
        out_shape=jax.ShapeDtypeStruct((1, B), jnp.float32),
        grid=(num_tiles,),
        in_specs=[
            # Ragged last tile (B % TM != 0) is handled by Pallas block
            # padding on reads / masked writes on the output.
            pl.BlockSpec((TM, NUM_COLUMNS), lambda i: (i, 0)),
            resident(w1), resident(b1),
            resident(w2t), resident(b2c),
            resident(w3t), resident(b3),
        ],
        out_specs=pl.BlockSpec((1, TM), lambda i: (0, i)),        # lane-dense row
        compiler_params=pltpu.CompilerParams(
            dimension_semantics=("parallel",),                    # megacore on v7x
            # VMEM budget @ TM=8192: x tile 2.2 MiB x 2 buffers + ~2.5 MiB of
            # f32 intermediates (h1/h2t) + tiny weights ~= 8 MiB. 48 MiB keeps
            # headroom on all generations (v7x physical VMEM is 64 MiB/TC).
            vmem_limit_bytes=48 * 1024 * 1024,
        ),
    )(x, w1, b1, w2t, b2c, w3t, b3)

    # Layout plumbing back to the PyTorch (B, 1) shape; tile order == batch order.
    return out[0, :B].reshape(B, 1)


def init_params(key):
    """PyTorch nn.Linear-style init (uniform +/- 1/sqrt(fan_in)); weights (in, out)."""
    dims = [(NUM_COLUMNS, N_HIDDEN), (N_HIDDEN, N_HIDDEN // 2), (N_HIDDEN // 2, 1)]
    params = []
    for (fan_in, fan_out) in dims:
        key, kw, kb = jax.random.split(key, 3)
        bound = 1.0 / jnp.sqrt(jnp.float32(fan_in))
        w = jax.random.uniform(kw, (fan_in, fan_out), jnp.float32, -bound, bound)
        b = jax.random.uniform(kb, (1, fan_out), jnp.float32, -bound, bound)
        params.extend([w, b])
    return tuple(params)


def _reference(x, params):
    """Pure-f32 reference matching the PyTorch forward."""
    w1, b1, w2, b2, w3, b3 = params
    dot = lambda a, b: jnp.dot(a, b, precision=jax.lax.Precision.HIGHEST)
    h1 = jnp.maximum(dot(x, w1) + b1, 0.0)
    h2 = jnp.maximum(dot(h1, w2) + b2, 0.0)
    return jax.nn.sigmoid(dot(h2, w3) + b3)


if __name__ == "__main__":
    key = jax.random.PRNGKey(0)
    key, kx1, kx2 = jax.random.split(key, 3)
    params = init_params(key)

    # Small primary test (single tile, partial block both in and out).
    batch = 8
    x = jax.random.normal(kx1, (batch, NUM_COLUMNS), dtype=jnp.float32)
    out = jax.block_until_ready(rank_predictor_ensemble(x, params))
    ref = _reference(x, params)
    assert out.shape == (batch, 1)
    assert jnp.allclose(out, ref, atol=5e-3), float(jnp.max(jnp.abs(out - ref)))

    # Multi-tile test (grid > 1, ragged last tile, tile ordering).
    batch2 = 2500
    x2 = jax.random.normal(kx2, (batch2, NUM_COLUMNS), dtype=jnp.float32)
    out2 = jax.block_until_ready(rank_predictor_ensemble(x2, params))
    ref2 = _reference(x2, params)
    assert out2.shape == (batch2, 1)
    assert jnp.allclose(out2, ref2, atol=5e-3), float(jnp.max(jnp.abs(out2 - ref2)))

    print("KERNEL_OK")
</pallas_src>

<mosaic_0001>
module attributes {stable_mosaic.version = 11 : i64} {
  func.func @_mlp_kernel(%arg0: i32, %arg1: memref<128x67xf32, #tpu.memory_space<vmem>>, %arg2: memref<67x32xf32, #tpu.memory_space<vmem>>, %arg3: memref<1x32xf32, #tpu.memory_space<vmem>>, %arg4: memref<16x32xf32, #tpu.memory_space<vmem>>, %arg5: memref<16x1xf32, #tpu.memory_space<vmem>>, %arg6: memref<1x16xf32, #tpu.memory_space<vmem>>, %arg7: memref<1x1xf32, #tpu.memory_space<vmem>>, %arg8: memref<1x128xf32, #tpu.memory_space<vmem>>) attributes {dimension_semantics = [#tpu.dimension_semantics<parallel>], iteration_bounds = array<i64: 1>, scalar_prefetch = 0 : i64, scratch_operands = 0 : i64, tpu.core_type = #tpu.core_type<tc>, window_params = [{transform_indices = @transform_0, window_bounds = array<i64: 128, 67>}, {pipeline_mode = #tpu.pipeline_mode<synchronous>, transform_indices = @transform_1, window_bounds = array<i64: 67, 32>}, {pipeline_mode = #tpu.pipeline_mode<synchronous>, transform_indices = @transform_2, window_bounds = array<i64: 1, 32>}, {pipeline_mode = #tpu.pipeline_mode<synchronous>, transform_indices = @transform_3, window_bounds = array<i64: 16, 32>}, {pipeline_mode = #tpu.pipeline_mode<synchronous>, transform_indices = @transform_4, window_bounds = array<i64: 16, 1>}, {pipeline_mode = #tpu.pipeline_mode<synchronous>, transform_indices = @transform_5, window_bounds = array<i64: 1, 16>}, {pipeline_mode = #tpu.pipeline_mode<synchronous>, transform_indices = @transform_6, window_bounds = array<i64: 1, 1>}, {transform_indices = @transform_7, window_bounds = array<i64: 1, 128>}]} {
    %c0 = arith.constant 0 : index
    %c0_0 = arith.constant 0 : index
    %0 = vector.load %arg1[%c0, %c0_0] : memref<128x67xf32, #tpu.memory_space<vmem>>, vector<128x67xf32>
    %c0_1 = arith.constant 0 : index
    %c0_2 = arith.constant 0 : index
    %1 = vector.load %arg2[%c0_1, %c0_2] : memref<67x32xf32, #tpu.memory_space<vmem>>, vector<67x32xf32>
    %cst = arith.constant dense<0.000000e+00> : vector<128x32xf32>
    %2 = tpu.matmul %0, %1, %cst {dimension_numbers = #tpu.dot_dimension_numbers<[1], [0], [0], [1], [0, 0, 1, 1], [], []>} : vector<128x67xf32>, vector<67x32xf32>, vector<128x32xf32> -> vector<128x32xf32>
    %c0_3 = arith.constant 0 : index
    %c0_4 = arith.constant 0 : index
    %3 = vector.load %arg3[%c0_3, %c0_4] : memref<1x32xf32, #tpu.memory_space<vmem>>, vector<1x32xf32>
    %4 = vector.broadcast %3 : vector<1x32xf32> to vector<128x32xf32>
    %5 = arith.addf %2, %4 : vector<128x32xf32>
    %cst_5 = arith.constant 0.000000e+00 : f32
    %6 = vector.broadcast %cst_5 : f32 to vector<128x32xf32>
    %7 = arith.maximumf %5, %6 : vector<128x32xf32>
    %c0_6 = arith.constant 0 : index
    %c0_7 = arith.constant 0 : index
    %8 = vector.load %arg4[%c0_6, %c0_7] : memref<16x32xf32, #tpu.memory_space<vmem>>, vector<16x32xf32>
    %cst_8 = arith.constant dense<0.000000e+00> : vector<16x128xf32>
    %9 = tpu.matmul %8, %7, %cst_8 {dimension_numbers = #tpu.dot_dimension_numbers<[1], [1], [0], [0], [0, 0, 1, 0], [], []>} : vector<16x32xf32>, vector<128x32xf32>, vector<16x128xf32> -> vector<16x128xf32>
    %c0_9 = arith.constant 0 : index
    %c0_10 = arith.constant 0 : index
    %10 = vector.load %arg5[%c0_9, %c0_10] : memref<16x1xf32, #tpu.memory_space<vmem>>, vector<16x1xf32>
    %11 = vector.broadcast %10 : vector<16x1xf32> to vector<16x128xf32>
    %12 = arith.addf %9, %11 : vector<16x128xf32>
    %cst_11 = arith.constant 0.000000e+00 : f32
    %13 = vector.broadcast %cst_11 : f32 to vector<16x128xf32>
    %14 = arith.maximumf %12, %13 : vector<16x128xf32>
    %c0_12 = arith.constant 0 : index
    %c0_13 = arith.constant 0 : index
    %15 = vector.load %arg6[%c0_12, %c0_13] : memref<1x16xf32, #tpu.memory_space<vmem>>, vector<1x16xf32>
    %cst_14 = arith.constant dense<0.000000e+00> : vector<1x128xf32>
    %16 = tpu.matmul %15, %14, %cst_14 {dimension_numbers = #tpu.dot_dimension_numbers<[1], [0], [0], [1], [0, 0, 1, 1], [], []>} : vector<1x16xf32>, vector<16x128xf32>, vector<1x128xf32> -> vector<1x128xf32>
    %c0_15 = arith.constant 0 : index
    %c0_16 = arith.constant 0 : index
    %17 = vector.load %arg7[%c0_15, %c0_16] : memref<1x1xf32, #tpu.memory_space<vmem>>, vector<1x1xf32>
    %18 = vector.broadcast %17 : vector<1x1xf32> to vector<1x128xf32>
    %19 = arith.addf %16, %18 : vector<1x128xf32>
    %20 = arith.negf %19 : vector<1x128xf32>
    %21 = math.exp %20 : vector<1x128xf32>
    %cst_17 = arith.constant 1.000000e+00 : f32
    %22 = vector.broadcast %cst_17 : f32 to vector<1x128xf32>
    %23 = arith.addf %22, %21 : vector<1x128xf32>
    %24 = arith.divf %22, %23 : vector<1x128xf32>
    %c0_18 = arith.constant 0 : index
    %c0_19 = arith.constant 0 : index
    %25 = vector.load %arg8[%c0_18, %c0_19] : memref<1x128xf32, #tpu.memory_space<vmem>>, vector<1x128xf32>
    tpu.vector_store %arg8[%c0_18, %c0_19], %24 {strides = array<i32>} : memref<1x128xf32, #tpu.memory_space<vmem>>, vector<1x128xf32>,
    return
  }
  func.func @transform_0(%arg0: i32) -> (i32, i32) {
    %c0_i32 = arith.constant 0 : i32
    %c0_i32_0 = arith.constant 0 : i32
    return %arg0, %c0_i32 : i32, i32
  }
  func.func @transform_1(%arg0: i32) -> (i32, i32) {
    %c0_i32 = arith.constant 0 : i32
    %c0_i32_0 = arith.constant 0 : i32
    %c0_i32_1 = arith.constant 0 : i32
    return %c0_i32, %c0_i32_0 : i32, i32
  }
  func.func @transform_2(%arg0: i32) -> (i32, i32) {
    %c0_i32 = arith.constant 0 : i32
    %c0_i32_0 = arith.constant 0 : i32
    %c0_i32_1 = arith.constant 0 : i32
    return %c0_i32, %c0_i32_0 : i32, i32
  }
  func.func @transform_3(%arg0: i32) -> (i32, i32) {
    %c0_i32 = arith.constant 0 : i32
    %c0_i32_0 = arith.constant 0 : i32
    %c0_i32_1 = arith.constant 0 : i32
    return %c0_i32, %c0_i32_0 : i32, i32
  }
  func.func @transform_4(%arg0: i32) -> (i32, i32) {
    %c0_i32 = arith.constant 0 : i32
    %c0_i32_0 = arith.constant 0 : i32
    %c0_i32_1 = arith.constant 0 : i32
    return %c0_i32, %c0_i32_0 : i32, i32
  }
  func.func @transform_5(%arg0: i32) -> (i32, i32) {
    %c0_i32 = arith.constant 0 : i32
    %c0_i32_0 = arith.constant 0 : i32
    %c0_i32_1 = arith.constant 0 : i32
    return %c0_i32, %c0_i32_0 : i32, i32
  }
  func.func @transform_6(%arg0: i32) -> (i32, i32) {
    %c0_i32 = arith.constant 0 : i32
    %c0_i32_0 = arith.constant 0 : i32
    %c0_i32_1 = arith.constant 0 : i32
    return %c0_i32, %c0_i32_0 : i32, i32
  }
  func.func @transform_7(%arg0: i32) -> (i32, i32) {
    %c0_i32 = arith.constant 0 : i32
    %c0_i32_0 = arith.constant 0 : i32
    return %c0_i32, %arg0 : i32, i32
  }
}

</mosaic_0001>

<bundles_post_ra>
// kernel: tpu_custom_call.1
= control target key start
LH: loop header
LB: loop body
LE: loop exit
PB: predicated region body
PF: predicated region fallthrough
CT: control target
= control target key end

     0   :  { %s1006_s0 = inlined_call_operand.vmem [shape: f32[8,67], index: 0, kind: input, shape index: {}]   ;;  %s1007_s1 = inlined_call_operand.vmem [shape: f32[67,32], index: 1, kind: input, shape index: {}]   ;;  %s1008_s2 = inlined_call_operand.vmem [shape: f32[1,32], index: 2, kind: input, shape index: {}]   ;;  %s1009_s3 = inlined_call_operand.vmem [shape: f32[16,32], index: 3, kind: input, shape index: {}]   ;;  %s1010_s4 = inlined_call_operand.vmem [shape: f32[16,1], index: 4, kind: input, shape index: {}]   ;;  %s1011_s5 = inlined_call_operand.vmem [shape: f32[1,16], index: 5, kind: input, shape index: {}]   ;;  %s1012_s6 = inlined_call_operand.<no memory space> [shape: f32[1,1], index: 6, kind: input, shape index: {}]   ;;  %s1013_s7 = inlined_call_operand.hbm [shape: f32[1,8], index: 7, kind: output, shape index: {}]  }
   0x1   :  { %v12_v0 = vstv %s1012_s6 }
   0x2   :  { %13 = vst [vmem:[#allocation2] sm:$0x1] %v12_v0 }
   0x3   :  { %v45_v1 = vld [vmem:[%s1007_s1] sm:$0xff]  ;;  %v46_v2 = vld [vmem:[%s1007_s1 + $0x8] sm:$0xff]  ;;  %v47_v3 = vld [vmem:[%s1007_s1 + $0x10] sm:$0xff]  ;;  %vm61_vm0 = vcmask 547840  }
   0x4   :  { %v695_v4 = vpack.c.bf16 %v46_v2, %v45_v1  ;;  %v48_v5 = vld [vmem:[%s1007_s1 + $0x18] sm:$0xff]  ;;  %v49_v7 = vld [vmem:[%s1007_s1 + $0x20] sm:$0xff]  ;;  %v50_v8 = vld [vmem:[%s1007_s1 + $0x28] sm:$0xff] }
   0x5   :  { %v699_v6 = vpack.c.bf16 %v48_v5, %v47_v3  ;;  %v29_v9 = vld [vmem:[%s1006_s0] sm:$0xff]  ;;  %v703_v10 = vpack.c.bf16 %v50_v8, %v49_v7  ;;  %v51_v11 = vld [vmem:[%s1007_s1 + $0x30] sm:$0xff]  ;;  %v52_v12 = vld [vmem:[%s1007_s1 + $0x38] sm:$0xff] }
   0x6   :  { %696 = vmatprep.subr.bf16.mxu0 %v695_v4  ;;  %629 = vmatprep.mubr.msk.f32.mxu0 %vm61_vm0, %v29_v9 }
   0x7   :  { %698 = vmatpush3.bf16.msra.mxu0 %v695_v4 }
   0x8   :  { %700 = vmatprep.subr.bf16.mxu0 %v699_v6 }
   0xb   :  { %702 = vmatpush3.bf16.msra.mxu0 %v699_v6 }
   0xc   :  { %14 = vsyncpa [#allocation4], 0  ;;  %704 = vmatprep.subr.bf16.mxu0 %v703_v10  ;;  %v707_v13 = vpack.c.bf16 %v52_v12, %v51_v11  ;;  %v53_v14 = vld [vmem:[%s1007_s1 + $0x40] sm:$0x7]  ;;  %vm110_vm1 = vcmask 1042432   ;;  %v30_v15 = vld [vmem:[%s1006_s0 + $0x8] sm:$0xff] }
   0xd   :  { %v31_v16 = vld [vmem:[%s1006_s0 + $0x10] sm:$0xff]  ;;  %v32_v17 = vld [vmem:[%s1006_s0 + $0x18] sm:$0xff]  ;;  %v33_v18 = vld [vmem:[%s1006_s0 + $0x20] sm:$0xff]  ;;  %vm289_vm2 = vcmask 261120   ;;  %v797_v32 = vmov 0   ;;  %vm799_vm4 = vmmov 0  }
   0xe   :  { %v34_v19 = vld [vmem:[%s1006_s0 + $0x28] sm:$0xff]  ;;  %v35_v20 = vld [vmem:[%s1006_s0 + $0x30] sm:$0xff]  ;;  %v36_v21 = vld [vmem:[%s1006_s0 + $0x38] sm:$0xff]  ;;  %767 = vset.pattern.permute.xlu0 %v797_v32  ;;  %768 = vset.pattern.permute.xlu1 %v797_v32  ;;  %vm432_vm5 = vcmask 130048   ;;  %s801_s6 = smov [#allocation3]  }
   0xf   :  { %706 = vmatpush3.bf16.msra.mxu0 %v703_v10  ;;  %v37_v22 = vld [vmem:[%s1006_s0 + $0x40] sm:$0xff]  ;;  %v38_v23 = vld [vmem:[%s1006_s0 + $0x48] sm:$0xff]  ;;  %v39_v24 = vld [vmem:[%s1006_s0 + $0x50] sm:$0xff]  ;;  %s519_s11 = sshll.u32 %s801_s6, 4  ;;  %s520_s11 = int_to_ptr.vmem [resolvable:$true] %s519_s11 }
  0x10   :  { %708 = vmatprep.subr.bf16.mxu0 %v707_v13  ;;  %v40_v25 = vld [vmem:[%s1006_s0 + $0x58] sm:$0xff]  ;;  %v41_v26 = vld [vmem:[%s1006_s0 + $0x60] sm:$0xff]  ;;  %v42_v27 = vld [vmem:[%s1006_s0 + $0x68] sm:$0xff]  ;;  %s777_s12 = scalar_lea.vmem %s520_s11, 32  ;;  %p778_p1 = scmp.lt.s32.totalorder %s520_s11, %s520_s11 }
  0x11   :  { %v43_v28 = vld [vmem:[%s1006_s0 + $0x70] sm:$0xff]  ;;  %v44_v29 = vld [vmem:[%s1006_s0 + $0x78] sm:$0xff]  ;;  %v275_v30 = vld [vmem:[%s1009_s3] sm:$0xff] }
  0x12   :  { %685 = vmatprep.mubr.msk.f32.mxu1 %vm289_vm2, %v275_v30  ;;  %v277_v31 = vld [vmem:[%s1010_s4] sm:$0xff]  ;;  %v278_v33 = vld [vmem:[%s1010_s4 + $0x8] sm:$0xff]  ;;  %vm951_vm3 = vmpackc.low %vm289_vm2, %vm289_vm2  ;;  %v800_v30 = vmov 0.0  }
  0x13   :  { %710 = vmatpush3.bf16.msra.mxu0 %v707_v13  ;;  %281 = vperm.xlu0 %767, %v277_v31   ;;  %v527_v34 = vld [vmem:[%s1008_s2] ss:$0 sm:$0xff] }
  0x14   :  { %627 = vmatprep.subr.msk.mxu0 %vm110_vm1, %v53_v14  ;;  %v422_v31 = vld [vmem:[#allocation2] sm:$0x1] }
  0x15   :  { %425 = vperm.xlu1 %768, %v422_v31  }
  0x17   :  { %628 = vmatpush3.msk.msra.mxu0 %vm110_vm1, %v53_v14  ;;  %286 = vperm.xlu0 %767, %v278_v33  }
  0x18   :  { %630 = vmatmul.mubr.msk.f32.vlgmr.msra.gmra.mrb[0].mxu0 %vm61_vm0, %v30_v15 }
  0x19   :  { %632 = vmatprep.mubr.msk.f32.mxu0 %vm61_vm0, %v31_v16 }
  0x1c   :  { %633 = vmatmul.mubr.msk.f32.gmra.mrb[2].mxu0 %vm61_vm0, %v32_v17 }
  0x1d   :  { %635 = vmatprep.mubr.msk.f32.mxu0 %vm61_vm0, %v33_v18 }
  0x20   :  { %636 = vmatmul.mubr.msk.f32.gmra.mrb[4].mxu0 %vm61_vm0, %v34_v19 }
  0x21   :  { %638 = vmatprep.mubr.msk.f32.mxu0 %vm61_vm0, %v35_v20 }
  0x24   :  { %639 = vmatmul.mubr.msk.f32.gmra.mrb[6].mxu0 %vm61_vm0, %v36_v21 }
  0x25   :  { %641 = vmatprep.mubr.msk.f32.mxu0 %vm61_vm0, %v37_v22 }
  0x28   :  { %642 = vmatmul.mubr.msk.f32.gmra.mrb[8].mxu0 %vm61_vm0, %v38_v23 }
  0x29   :  { %644 = vmatprep.mubr.msk.f32.mxu0 %vm61_vm0, %v39_v24 }
  0x2c   :  { %645 = vmatmul.mubr.msk.f32.gmra.mrb[10].mxu0 %vm61_vm0, %v40_v25 }
  0x2d   :  { %647 = vmatprep.mubr.msk.f32.mxu0 %vm61_vm0, %v41_v26 }
  0x30   :  { %648 = vmatmul.mubr.msk.f32.gmra.mrb[12].mxu0 %vm61_vm0, %v42_v27 }
  0x31   :  { %650 = vmatprep.mubr.msk.f32.mxu0 %vm61_vm0, %v43_v28  ;;  %v276_v28 = vld [vmem:[%s1009_s3 + $0x8] sm:$0xff] }
  0x34   :  { %651 = vmatmul.mubr.msk.f32.gmra.mrb[14].mxu0 %vm61_vm0, %v44_v29  ;;  %v798_v29 = vmov 0.0|0.0  }
  0x35   :  { %759 = vmatprep.subr.bf16.mxu0 %v798_v29  ;;  %692 = vmatprep.mubr.msk.f32.mxu0 %vm799_vm4, %v800_v30 }
  0x92   :  { %v282_v32 = vpop.permute.xlu0 %281 }
  0x96   :  { %v287_v33 = vpop.permute.xlu0 %286 }
  0xeb   :  { %v631_v35 = vpop.f32.mrb[0].mxu0 }
  0xec   :  { %v186_v36 = vadd.f32 %v631_v35, %v527_v34  ;;  %v180_v37 = vpop.f32.mrb[1].mxu0 }
  0xed   :  { %v181_v38 = vadd.f32 %v527_v34, %v180_v37 }
  0xee   :  { %v260_v39 = vmax.f32 %v186_v36, 0.0 }
  0xef   :  { %v259_v40 = vmax.f32 %v181_v38, 0.0  ;;  %v634_v41 = vpop.f32.mrb[2].mxu0 }
  0xf0   :  { %v196_v42 = vadd.f32 %v634_v41, %v527_v34  ;;  %v190_v43 = vpop.f32.mrb[3].mxu0  ;;  %v421_v41 = vld [vmem:[%s1011_s5] sm:$0x1]  ;;  %s773_s5 = scalar_lea.vmem %s520_s11, 16 }
  0xf1   :  { %v191_v45 = vadd.f32 %v527_v34, %v190_v43  ;;  %v711_v46 = vpack.c.bf16 %v260_v39, %v259_v40  ;;  %p774_p0 = scmp.ne.s32.totalorder %s520_s11, %s773_s5  ;;  %p779_p2 = scmp.lt.s32.totalorder %s777_s12, %s773_s5 }
  0xf2   :  { %v262_v47 = vmax.f32 %v196_v42, 0.0  ;;  %v428_v42 = vlaneseq }
  0xf3   :  { %v261_v48 = vmax.f32 %v191_v45, 0.0  ;;  %713 = vmatprep.subr.msk.bf16.mxu1 %vm951_vm3, %v711_v46  ;;  %v637_v49 = vpop.f32.mrb[4].mxu0  ;;  %v426_v45 = vpop.permute.xlu1 %425  ;;  %p780_p3 = por %p779_p2, %p778_p1 }
  0xf4   :  { %716 = vmatpush3.bf16.xpose.msk.msra.mxu1 %vm951_vm3, %v711_v46  ;;  %v206_v50 = vadd.f32 %v637_v49, %v527_v34  ;;  %v200_v51 = vpop.f32.mrb[5].mxu0  ;;  %v429_v43 = vshrl.u32 %v428_v42, 7 }
  0xf5   :  { %v717_v52 = vpack.c.bf16 %v262_v47, %v261_v48  ;;  %v201_v53 = vadd.f32 %v527_v34, %v200_v51  ;;  %p781_p4 = pnand %p780_p3, %p774_p0 }
  0xf6   :  { %v264_v54 = vmax.f32 %v206_v50, 0.0  ;;  %v430_v44 = vsub.s32 0, %v429_v43 }
  0xf7   :  { %719 = vmatprep.subr.msk.bf16.mxu1 %vm951_vm3, %v717_v52  ;;  %v263_v55 = vmax.f32 %v201_v53, 0.0  ;;  %v640_v56 = vpop.f32.mrb[6].mxu0 }
  0xf8   :  { %v216_v57 = vadd.f32 %v640_v56, %v527_v34  ;;  %v210_v58 = vpop.f32.mrb[7].mxu0  ;;  %v431_v46 = vrot.slane %v426_v45, %v430_v44 }
  0xf9   :  { %v723_v59 = vpack.c.bf16 %v264_v54, %v263_v55  ;;  %v211_v60 = vadd.f32 %v527_v34, %v210_v58 }
  0xfa   :  { %v266_v61 = vmax.f32 %v216_v57, 0.0 }
  0xfb   :  { %v265_v62 = vmax.f32 %v211_v60, 0.0  ;;  %v643_v63 = vpop.f32.mrb[8].mxu0 }
  0xfc   :  { %722 = vmatpush3.bf16.xpose.msk.msra.mxu1 %vm951_vm3, %v717_v52  ;;  %v226_v0 = vadd.f32 %v643_v63, %v527_v34  ;;  %v220_v1 = vpop.f32.mrb[9].mxu0 }
  0xfd   :  { %725 = vmatprep.subr.msk.bf16.mxu1 %vm951_vm3, %v723_v59  ;;  %v729_v2 = vpack.c.bf16 %v266_v61, %v265_v62  ;;  %v221_v3 = vadd.f32 %v527_v34, %v220_v1 }
  0xfe   :  { %v268_v4 = vmax.f32 %v226_v0, 0.0 }
  0xff   :  { %v267_v5 = vmax.f32 %v221_v3, 0.0  ;;  %v646_v6 = vpop.f32.mrb[10].mxu0 }
 0x100   :  { %v236_v7 = vadd.f32 %v646_v6, %v527_v34  ;;  %v230_v8 = vpop.f32.mrb[11].mxu0 }
 0x101   :  { %v735_v9 = vpack.c.bf16 %v268_v4, %v267_v5  ;;  %v231_v10 = vadd.f32 %v527_v34, %v230_v8 }
 0x102   :  { %v270_v11 = vmax.f32 %v236_v7, 0.0 }
 0x103   :  { %v269_v12 = vmax.f32 %v231_v10, 0.0  ;;  %v649_v13 = vpop.f32.mrb[12].mxu0 }
 0x104   :  { %728 = vmatpush3.bf16.xpose.msk.msra.mxu1 %vm951_vm3, %v723_v59  ;;  %v246_v14 = vadd.f32 %v649_v13, %v527_v34  ;;  %v240_v15 = vpop.f32.mrb[13].mxu0 }
 0x105   :  { %731 = vmatprep.subr.msk.bf16.mxu1 %vm951_vm3, %v729_v2  ;;  %v741_v16 = vpack.c.bf16 %v270_v11, %v269_v12  ;;  %v241_v17 = vadd.f32 %v527_v34, %v240_v15 }
 0x106   :  { %v272_v18 = vmax.f32 %v246_v14, 0.0 }
 0x107   :  { %v271_v19 = vmax.f32 %v241_v17, 0.0  ;;  %v652_v20 = vpop.f32.mrb[14].mxu0 }
 0x108   :  { %v256_v21 = vadd.f32 %v652_v20, %v527_v34  ;;  %v250_v22 = vpop.f32.mrb[15].mxu0 }
 0x109   :  { %v747_v23 = vpack.c.bf16 %v272_v18, %v271_v19  ;;  %v251_v24 = vadd.f32 %v527_v34, %v250_v22 }
 0x10a   :  { %v274_v25 = vmax.f32 %v256_v21, 0.0 }
 0x10b   :  { %v273_v26 = vmax.f32 %v251_v24, 0.0 }
 0x10c   :  { %734 = vmatpush3.bf16.xpose.msk.msra.mxu1 %vm951_vm3, %v729_v2 }
 0x10d   :  { %737 = vmatprep.subr.msk.bf16.mxu1 %vm951_vm3, %v735_v9  ;;  %v753_v27 = vpack.c.bf16 %v274_v25, %v273_v26 }
 0x114   :  { %740 = vmatpush3.bf16.xpose.msk.msra.mxu1 %vm951_vm3, %v735_v9 }
 0x115   :  { %743 = vmatprep.subr.msk.bf16.mxu1 %vm951_vm3, %v741_v16 }
 0x11c   :  { %746 = vmatpush3.bf16.xpose.msk.msra.mxu1 %vm951_vm3, %v741_v16 }
 0x11d   :  { %749 = vmatprep.subr.msk.bf16.mxu1 %vm951_vm3, %v747_v23 }
 0x124   :  { %752 = vmatpush3.bf16.xpose.msk.msra.mxu1 %vm951_vm3, %v747_v23 }
 0x125   :  { %755 = vmatprep.subr.msk.bf16.mxu1 %vm951_vm3, %v753_v27 }
 0x12c   :  { %758 = vmatpush3.bf16.xpose.msk.msra.mxu1 %vm951_vm3, %v753_v27 }
 0x133   :  { %686 = vmatmul.mubr.msk.f32.vlgmr.msra.gmra.mrb[0].mxu1 %vm289_vm2, %v276_v28 }
 0x206   :  { %v687_v34 = vpop.f32.mrb[0].mxu1 }
 0x207   :  { %v416_v35 = vadd.f32 %v687_v34, %v287_v33  ;;  %v410_v36 = vpop.f32.mrb[1].mxu1 }
 0x208   :  { %v411_v37 = vadd.f32 %v410_v36, %v282_v32 }
 0x209   :  { %v420_v38 = vmax.f32 %v416_v35, 0.0 }
 0x20a   :  { %v419_v39 = vmax.f32 %v411_v37, 0.0 }
 0x20c   :  { %v760_v40 = vpack.c.bf16 %v420_v38, %v419_v39 }
 0x20e   :  { %761 = vmatpush3.bf16.msra.mxu0 %v760_v40 }
 0x211   :  { %693 = vmatmul.mubr.msk.f32.vlgmr.msra.gmra.mrb[16].mxu0 %vm432_vm5, %v421_v41 }
 0x2e4   :  { %v502_v47 = vpop.f32.mrb[16].mxu0 }
 0x2e5   :  { %v503_v48 = vadd.f32 %v502_v47, %v431_v46  ;;  %v694_v49 = vpop.f32.mrb[17].mxu0 }
 0x2e7   :  { %v564_v50 = vmul.f32 -1.442695, %v503_v48 }
 0x2e9   :  { %769 = vpow2.f32 %v564_v50 }
 0x2f3   :  { %v770_v51 = vpop.eup %769 }
 0x2f4   :  { %v509_v52 = vadd.f32 1.0, %v770_v51 }
 0x2f6   :  { %771 = vrcp.f32 %v509_v52 }
 0x300   :  { %v772_v53 = vpop.eup %771 }
 0x301   :  { %512 = vst [vmem:[#allocation3] sm:$0x1] %v772_v53 }
 0x302   :  { %784 = shalt.err (!%p781_p4)
}
 0x303   :  { %s785_s15 = scalar_lea.hbm %s1013_s7, 16 }
 0x304   :  { %p786_p5 = scmp.ne.s32.totalorder %s1013_s7, %s785_s15  ;;  %p789_p6 = scmp.lt.u32.totalorder %s785_s15, %s1013_s7 }
 0x306   :  { %p791_p7 = pnand %p789_p6, %p786_p5 }
 0x308   :  { %794 = shalt.err (!%p791_p7)
}
 0x309   :  { %522 = dma.vmem_to_hbm [thread:$0]  %s520_s11, 16, %s1013_s7, [#allocation4]  }
 0x30a   :  { %795 = dma.done.wait [#allocation4], 16  }
 0x30b   :  { %796 = vsyncadd [#allocation4], 4294967280 }
 0x30c   :  { %526 = vsyncpa [#allocation4], 1 }

</bundles_post_ra>
